<compile_context>
chip_gen: v6e
topology: v6e:2x2x1
jax: 0.10.0
libtpu: 0.0.40
codegen_flags: <defaults>
</compile_context>

<pallas_src>
import jax
import jax.numpy as jnp
import numpy as np
from jax.experimental import pallas as pl
from jax.experimental.pallas import tpu as pltpu


def _round_up(v: int, m: int) -> int:
    return (v + m - 1) // m * m


def _cdiv(a: int, b: int) -> int:
    return -(-a // b)


# ----------------------------------------------------------------------------
# Kernel: one (tile_m, tile_n) output tile of sin(x @ W_T + b)
# (omega_0 is pre-folded into W_T and b at init time).
# ----------------------------------------------------------------------------
def _sine_kernel(x_ref, wt_ref, b_ref, o_ref):
    z = jnp.dot(x_ref[...], wt_ref[...], preferred_element_type=jnp.float32)
    z = z + b_ref[...]                       # f32 (1, tn) bias broadcast over rows
    o_ref[...] = jnp.sin(z).astype(o_ref.dtype)


# ----------------------------------------------------------------------------
# One-time parameter preparation (call at init, NOT per forward).
# ----------------------------------------------------------------------------
def prepare_sine_layer_params(w, b, omega_0=30.0):
    """Fold omega_0 and lay parameters out for the kernel.

    w: [out_features, in_features]   (PyTorch nn.Linear layout)
    b: [out_features]
    Returns (w_t, b2, out_features) with
      w_t: [in_features, Np]  = omega_0 * W^T, Np = round_up(out_features, 128)
      b2:  [1, Np] float32    = omega_0 * b
    """
    N, K = w.shape
    Np = _round_up(N, 128)
    w_t = (jnp.transpose(w).astype(jnp.float32) * float(omega_0)).astype(w.dtype)
    b_f32 = b.astype(jnp.float32) * float(omega_0)
    if Np != N:
        w_t = jnp.pad(w_t, ((0, 0), (0, Np - N)))
        b_f32 = jnp.pad(b_f32, (0, Np - N))
    return w_t, b_f32.reshape(1, Np), N


def _vmem_capacity_bytes() -> int:
    try:
        return int(pltpu.get_tpu_info().vmem_capacity_bytes)
    except Exception:
        return 64 * 1024 * 1024  # conservative fallback (v7x-safe)


# ----------------------------------------------------------------------------
# Forward wrapper.
# ----------------------------------------------------------------------------
def sine_layer(x, w_t, b2, *, out_features=None, tile_m=1024, out_dtype=None):
    """sin(omega_0 * (x @ W^T + b)) with omega_0 pre-folded into (w_t, b2).

    x:   [..., in_features]
    w_t: [in_features, Np]   from prepare_sine_layer_params
    b2:  [1, Np] float32     from prepare_sine_layer_params
    Returns [..., out_features].
    """
    orig_shape = x.shape
    K = orig_shape[-1]
    x2 = x.reshape(-1, K)
    M = x2.shape[0]
    Kw, Np = w_t.shape
    assert K == Kw, "in_features mismatch"
    N = int(out_features) if out_features is not None else Np
    out_dtype = out_dtype or x.dtype

    in_isz = jnp.dtype(x.dtype).itemsize
    out_isz = jnp.dtype(out_dtype).itemsize
    w_isz = jnp.dtype(w_t.dtype).itemsize
    sub = {1: 32, 2: 16}.get(in_isz, 8)          # dtype-native sublane multiple

    # Generation-gated VMEM budget: ~3/8 of physical capacity.
    vmem_cap = _vmem_capacity_bytes()
    budget = max(24 << 20, vmem_cap * 3 // 8)

    # --- tile sizing --------------------------------------------------------
    m_full = _round_up(M, sub)
    tm = min(_round_up(int(tile_m), sub), m_full)
    if m_full >= 2 * 256:                        # keep >=2 parallel M tiles (v7x: 2 TCs)
        tm = min(tm, _round_up(_cdiv(M, 2), sub))
    tm_floor = max(min(256, m_full), sub)        # don't drop below 256 before shrinking N
    tn = Np                                       # W_T resident across M tiles by default

    def step_bytes(tm_, tn_):
        return (2 * tm_ * K * in_isz             # double-buffered x tile
                + 2 * tm_ * tn_ * out_isz        # double-buffered out tile
                + tm_ * tn_ * 4                  # f32 intermediate headroom
                + 2 * (K * tn_ * w_isz + tn_ * 4))  # W_T / bias tiles

    while step_bytes(tm, tn) > budget and (tm > tm_floor or tn > 128):
        if tm > tm_floor:
            tm = _round_up(max(tm // 2, sub), sub)
        else:
            tn = _round_up(max(tn // 2, 128), 128)
    while step_bytes(tm, tn) > budget and tm > sub:   # last resort (huge K)
        tm = _round_up(max(tm // 2, sub), sub)

    grid = (_cdiv(M, tm), _cdiv(Np, tn))

    cost = pl.CostEstimate(
        flops=2 * M * K * Np + M * Np,
        transcendentals=M * Np,
        bytes_accessed=(M * K * in_isz + K * Np * w_isz + Np * 4 + M * Np * out_isz),
    )
    vmem_limit = int(min(vmem_cap * 3 // 4,
                         max(32 << 20, step_bytes(tm, tn) * 3 // 2)))

    out = pl.pallas_call(
        _sine_kernel,
        out_shape=jax.ShapeDtypeStruct((M, Np), out_dtype),
        grid_spec=pltpu.PrefetchScalarGridSpec(
            num_scalar_prefetch=0,
            grid=grid,
            in_specs=[
                pl.BlockSpec((tm, K), lambda i, j: (i, 0)),   # x row tile
                pl.BlockSpec((K, tn), lambda i, j: (0, j)),   # W_T (resident when grid_n==1)
                pl.BlockSpec((1, tn), lambda i, j: (0, j)),   # f32 bias row
            ],
            out_specs=pl.BlockSpec((tm, tn), lambda i, j: (i, j)),
        ),
        compiler_params=pltpu.CompilerParams(
            dimension_semantics=("parallel", "parallel"),
            vmem_limit_bytes=vmem_limit,
        ),
        cost_estimate=cost,
    )(x2, w_t, b2)

    if N != Np:
        out = out[:, :N]                     # only when out_features % 128 != 0
    return out.reshape(*orig_shape[:-1], N)


# ----------------------------------------------------------------------------
# SIREN init matching SineLayer.init_weights (for the demo).
# ----------------------------------------------------------------------------
def init_siren_params(key, in_features, out_features, *, is_first=False,
                      omega_0=30, dtype=jnp.float32):
    kw, kb = jax.random.split(key)
    if is_first:
        bound_w = 1.0 / in_features
    else:
        bound_w = np.sqrt(6.0 / in_features) / omega_0
    w = jax.random.uniform(kw, (out_features, in_features), dtype=dtype,
                           minval=-bound_w, maxval=bound_w)
    bound_b = 1.0 / np.sqrt(in_features)     # torch.nn.Linear default bias init
    b = jax.random.uniform(kb, (out_features,), dtype=dtype,
                           minval=-bound_b, maxval=bound_b)
    return w, b


if __name__ == "__main__":
    key = jax.random.PRNGKey(0)
    k_x, k_p = jax.random.split(key)

    # Small shapes consistent with the module: 64 input coordinates,
    # in_features=16, out_features=32, first SIREN layer with omega_0=30.
    M, in_features, out_features = 64, 16, 32
    omega_0 = 30
    is_first = True

    x = jax.random.uniform(k_x, (M, in_features), dtype=jnp.float32,
                           minval=-1.0, maxval=1.0)
    w, b = init_siren_params(k_p, in_features, out_features,
                             is_first=is_first, omega_0=omega_0,
                             dtype=jnp.float32)

    # Pure-JAX reference of the forward semantics.
    ref = jnp.sin(omega_0 * (x @ w.T + b))

    # One-time parameter prep (omega folded, W transposed/padded, bias f32).
    w_t, b2, n_out = prepare_sine_layer_params(w, b, omega_0=omega_0)

    out = sine_layer(x, w_t, b2, out_features=n_out)
    out = jax.block_until_ready(out)
    np.testing.assert_allclose(np.asarray(out), np.asarray(ref),
                               rtol=1e-5, atol=1e-5)

    print("KERNEL_OK")
</pallas_src>

<mosaic_0001>
module attributes {stable_mosaic.version = 11 : i64} {
  func.func @_sine_kernel(%arg0: i32, %arg1: i32, %arg2: memref<64x16xf32, #tpu.memory_space<vmem>>, %arg3: memref<16x128xf32, #tpu.memory_space<vmem>>, %arg4: memref<1x128xf32, #tpu.memory_space<vmem>>, %arg5: memref<64x128xf32, #tpu.memory_space<vmem>>) attributes {dimension_semantics = [#tpu.dimension_semantics<parallel>, #tpu.dimension_semantics<parallel>], iteration_bounds = array<i64: 1, 1>, scalar_prefetch = 0 : i64, scratch_operands = 0 : i64, tpu.core_type = #tpu.core_type<tc>, window_params = [{transform_indices = @transform_0, window_bounds = array<i64: 64, 16>}, {transform_indices = @transform_1, window_bounds = array<i64: 16, 128>}, {transform_indices = @transform_2, window_bounds = array<i64: 1, 128>}, {transform_indices = @transform_3, window_bounds = array<i64: 64, 128>}]} {
    %c0 = arith.constant 0 : index
    %c0_0 = arith.constant 0 : index
    %0 = vector.load %arg2[%c0, %c0_0] : memref<64x16xf32, #tpu.memory_space<vmem>>, vector<64x16xf32>
    %c0_1 = arith.constant 0 : index
    %c0_2 = arith.constant 0 : index
    %1 = vector.load %arg3[%c0_1, %c0_2] : memref<16x128xf32, #tpu.memory_space<vmem>>, vector<16x128xf32>
    %cst = arith.constant dense<0.000000e+00> : vector<64x128xf32>
    %2 = tpu.matmul %0, %1, %cst {dimension_numbers = #tpu.dot_dimension_numbers<[1], [0], [0], [1], [0, 0, 1, 1], [], []>} : vector<64x16xf32>, vector<16x128xf32>, vector<64x128xf32> -> vector<64x128xf32>
    %c0_3 = arith.constant 0 : index
    %c0_4 = arith.constant 0 : index
    %3 = vector.load %arg4[%c0_3, %c0_4] : memref<1x128xf32, #tpu.memory_space<vmem>>, vector<1x128xf32>
    %4 = vector.broadcast %3 : vector<1x128xf32> to vector<64x128xf32>
    %5 = arith.addf %2, %4 : vector<64x128xf32>
    %6 = math.sin %5 : vector<64x128xf32>
    %c0_5 = arith.constant 0 : index
    %c0_6 = arith.constant 0 : index
    %7 = vector.load %arg5[%c0_5, %c0_6] : memref<64x128xf32, #tpu.memory_space<vmem>>, vector<64x128xf32>
    tpu.vector_store %arg5[%c0_5, %c0_6], %6 {strides = array<i32>} : memref<64x128xf32, #tpu.memory_space<vmem>>, vector<64x128xf32>,
    return
  }
  func.func @transform_0(%arg0: i32, %arg1: i32) -> (i32, i32) {
    %c0_i32 = arith.constant 0 : i32
    %c0_i32_0 = arith.constant 0 : i32
    return %arg0, %c0_i32 : i32, i32
  }
  func.func @transform_1(%arg0: i32, %arg1: i32) -> (i32, i32) {
    %c0_i32 = arith.constant 0 : i32
    %c0_i32_0 = arith.constant 0 : i32
    return %c0_i32, %arg1 : i32, i32
  }
  func.func @transform_2(%arg0: i32, %arg1: i32) -> (i32, i32) {
    %c0_i32 = arith.constant 0 : i32
    %c0_i32_0 = arith.constant 0 : i32
    return %c0_i32, %arg1 : i32, i32
  }
  func.func @transform_3(%arg0: i32, %arg1: i32) -> (i32, i32) {
    %c0_i32 = arith.constant 0 : i32
    return %arg0, %arg1 : i32, i32
  }
}

</mosaic_0001>

<bundles_post_ra>
// kernel: tpu_custom_call.1
= control target key start
LH: loop header
LB: loop body
LE: loop exit
PB: predicated region body
PF: predicated region fallthrough
CT: control target
= control target key end

     0   :  { %vm32_vm0 = vcmask 130048   ;;  %s1802_s0 = inlined_call_operand.vmem [shape: f32[64,16], index: 0, kind: input, shape index: {}]   ;;  %s1803_s1 = inlined_call_operand.vmem [shape: f32[16,128], index: 1, kind: input, shape index: {}]   ;;  %s1804_s2 = inlined_call_operand.vmem [shape: f32[1,128], index: 2, kind: input, shape index: {}]   ;;  %s1805_s3 = inlined_call_operand.hbm [shape: f32[64,128], index: 3, kind: output, shape index: {}]  }
   0x1   :  { %v24_v0 = vld [vmem:[%s1803_s1 + $0x8] sm:$0xff]  ;;  %v23_v1 = vld [vmem:[%s1803_s1] sm:$0xff] }
   0x2   :  { %1069 = vmatprep.subr.mxu0 %v24_v0  ;;  %1085 = vmatprep.subr.mxu1 %v24_v0  ;;  %v15_v2 = vld [vmem:[%s1802_s0] sm:$0xff]  ;;  %v16_v4 = vld [vmem:[%s1802_s0 + $0x8] sm:$0xff] }
   0x3   :  { %1070 = vmatpush3.msra.mxu0 %v24_v0  ;;  %1087 = vmatpush3.msra.mxu1 %v24_v0  ;;  %v19_v3 = vld [vmem:[%s1802_s0 + $0x20] sm:$0xff]  ;;  %v20_v5 = vld [vmem:[%s1802_s0 + $0x28] sm:$0xff] }
   0x4   :  { %1071 = vmatprep.subr.mxu0 %v23_v1  ;;  %1086 = vmatprep.subr.mxu1 %v23_v1 }
   0x5   :  { %8 = vsyncpa [#allocation3], 0  ;;  %1072 = vmatpush3.msra.mxu0 %v23_v1  ;;  %1088 = vmatpush3.msra.mxu1 %v23_v1  ;;  %v17_v6 = vld [vmem:[%s1802_s0 + $0x10] sm:$0xff]  ;;  %v18_v8 = vld [vmem:[%s1802_s0 + $0x18] sm:$0xff]  ;;  %v1185_v46 = vmov 683565275  }
   0x6   :  { %v21_v7 = vld [vmem:[%s1802_s0 + $0x30] sm:$0xff]  ;;  %1073 = vmatprep.mubr.msk.f32.mxu0 %vm32_vm0, %v15_v2  ;;  %1079 = vmatprep.mubr.msk.f32.mxu1 %vm32_vm0, %v19_v3  ;;  %v22_v9 = vld [vmem:[%s1802_s0 + $0x38] sm:$0xff]  ;;  %v1255_v10 = vld [vmem:[%s1804_s2] ss:$0 sm:$0xff]  ;;  %v1186_v50 = vmov 2475754826  }
   0x7   :  { %1074 = vmatmul.mubr.msk.f32.vlgmr.msra.gmra.mxu0 %vm32_vm0, %v16_v4  ;;  %1080 = vmatmul.mubr.msk.f32.vlgmr.msra.gmra.mxu1 %vm32_vm0, %v20_v5  ;;  %v1187_v52 = vmov 2131351028   ;;  %v1188_v54 = vmov 2102212464   ;;  %v1189_v56 = vmov 920167782  }
   0x8   :  { %1076 = vmatprep.mubr.msk.f32.mxu0 %vm32_vm0, %v17_v6  ;;  %1082 = vmatprep.mubr.msk.f32.mxu1 %vm32_vm0, %v21_v7  ;;  %v1190_v63 = vmov 1326507024  }
   0xb   :  { %1077 = vmatmul.mubr.msk.f32.gmra.mxu0 %vm32_vm0, %v18_v8  ;;  %1083 = vmatmul.mubr.msk.f32.gmra.mxu1 %vm32_vm0, %v22_v9 }
  0xc7   :  { %v1075_v11 = vpop.f32.mrf.mxu0  ;;  %v1081_v12 = vpop.f32.mrf.mxu1 }
  0xc8   :  { %v1258_v13 = vadd.f32 %v1075_v11, %v1255_v10  ;;  %v1261_v14 = vadd.f32 %v1081_v12, %v1255_v10 }
  0xc9   :  { %v123_v15 = vpop.f32.mrf.mxu0  ;;  %v143_v34 = vpop.f32.mrf.mxu1 }
  0xca   :  { %v266_v16 = vand.u32 2147483647, %v1258_v13  ;;  %v269_v17 = vand.u32 2139095040, %v1258_v13  ;;  %v682_v18 = vand.u32 2147483647, %v1261_v14  ;;  %v685_v19 = vand.u32 2139095040, %v1261_v14 }
  0xcb   :  { %v1270_v22 = vadd.f32 %v1255_v10, %v123_v15  ;;  %v1277_v40 = vadd.f32 %v1255_v10, %v143_v34  ;;  %vm268_vm14 = vcmp.lt.s32.totalorder %v1258_v13, 0 }
  0xcc   :  { %v270_v20 = vshrl.u32 %v269_v17, 23  ;;  %v273_v21 = vand.u32 8388607, %v266_v16  ;;  %v686_v23 = vshrl.u32 %v685_v19, 23  ;;  %v689_v24 = vand.u32 8388607, %v682_v18 }
  0xcd   :  { %v165_v27 = vand.u32 2139095040, %v1270_v22  ;;  %v162_v32 = vand.u32 2147483647, %v1270_v22  ;;  %vm1382_vm15 = vcmp.le.f32.partialorder %v266_v16, 0.7853982 }
  0xce   :  { %v1031_v25 = vadd.s32 4294967169, %v270_v20  ;;  %v1047_v26 = vadd.s32 4294967169, %v686_v23  ;;  %v274_v28 = vor.u32 8388608, %v273_v21  ;;  %v690_v30 = vor.u32 8388608, %v689_v24 }
  0xcf   :  { %v166_v33 = vshrl.u32 %v165_v27, 23  ;;  %v1287_v44 = vand.u32 8388607, %v162_v32 }
  0xd0   :  { %v276_v29 = vadd.s32 1, %v1031_v25  ;;  %v692_v31 = vadd.s32 1, %v1047_v26  ;;  %v1279_v41 = vshll.u32 %v274_v28, 8  ;;  %v1283_v43 = vshll.u32 %v690_v30, 8 }
  0xd1   :  { %v1027_v36 = vadd.s32 4294967169, %v166_v33 }
  0xd2   :  { %vm277_vm1 = vcmp.gt.s32.totalorder %v276_v29, 0  ;;  %vm693_vm2 = vcmp.gt.s32.totalorder %v692_v31, 0 }
  0xd3   :  { %v278_v35 = vsel %vm277_vm1, %v276_v29, 0  ;;  %v694_v39 = vsel %vm693_vm2, %v692_v31, 0  ;;  %v1290_v49 = vadd.s32 1, %v1027_v36 }
  0xd4   :  { %v279_v37 = vshrl.u32 %v278_v35, 5  ;;  %v280_v38 = vand.u32 31, %v278_v35  ;;  %v1281_v42 = vshrl.u32 %v694_v39, 5  ;;  %v696_v48 = vand.u32 31, %v694_v39 }
  0xd5   :  { %vm173_vm12 = vcmp.gt.s32.totalorder %v1290_v49, 0 }
  0xd6   :  { %v281_v45 = vsub.s32 32, %v280_v38  ;;  %v283_v47 = vshll.u32 %v1185_v46, %v280_v38  ;;  %v286_v51 = vshll.u32 %v1186_v50, %v280_v38  ;;  %v289_v53 = vshll.u32 %v1187_v52, %v280_v38 }
  0xd7   :  { %v292_v55 = vshll.u32 %v1188_v54, %v280_v38  ;;  %v295_v57 = vshll.u32 %v1189_v56, %v280_v38  ;;  %vm298_vm3 = vcmp.lt.s32.totalorder %v279_v37, 1  ;;  %vm299_vm4 = vcmp.lt.s32.totalorder %v279_v37, 2 }
  0xd8   :  { %v284_v58 = vshrl.u32 %v1186_v50, %v281_v45  ;;  %v287_v59 = vshrl.u32 %v1187_v52, %v281_v45  ;;  %v290_v60 = vshrl.u32 %v1188_v54, %v281_v45  ;;  %v282_v61 = vshrl.u32 %v1185_v46, %v281_v45 }
  0xd9   :  { %v293_v62 = vshrl.u32 %v1189_v56, %v281_v45  ;;  %v296_v0 = vshrl.u32 %v1190_v63, %v281_v45  ;;  %v697_v4 = vsub.s32 32, %v696_v48  ;;  %vm300_vm5 = vcmp.lt.s32.totalorder %v279_v37, 3 }
  0xda   :  { %v285_v1 = vor.u32 %v284_v58, %v283_v47  ;;  %v288_v2 = vor.u32 %v287_v59, %v286_v51  ;;  %v291_v3 = vor.u32 %v290_v60, %v289_v53  ;;  %vm301_vm6 = vcmp.lt.s32.totalorder %v279_v37, 4 }
  0xdb   :  { %v294_v5 = vor.u32 %v293_v62, %v292_v55  ;;  %v297_v6 = vor.u32 %v296_v0, %v295_v57  ;;  %v699_v19 = vshll.u32 %v1185_v46, %v696_v48  ;;  %v700_v23 = vshrl.u32 %v1186_v50, %v697_v4 }
  0xdc   :  { %v302_v7 = vsel %vm298_vm3, %v282_v61, %v285_v1  ;;  %v303_v8 = vsel %vm301_vm6, %v291_v3, 2102212464  ;;  %v306_v9 = vsel %vm298_vm3, %v285_v1, %v288_v2  ;;  %v310_v11 = vsel %vm298_vm3, %v288_v2, %v291_v3 }
  0xdd   :  { %v304_v12 = vsel %vm300_vm5, %v288_v2, %v303_v8  ;;  %v307_v15 = vsel %vm301_vm6, %v294_v5, 920167782  ;;  %v311_v17 = vsel %vm301_vm6, %v297_v6, 1326507024  ;;  %v702_v24 = vshll.u32 %v1186_v50, %v696_v48 }
  0xde   :  { %v308_v20 = vsel %vm300_vm5, %v291_v3, %v307_v15  ;;  %v312_v21 = vsel %vm300_vm5, %v294_v5, %v311_v17  ;;  %v305_v25 = vsel %vm299_vm4, %v302_v7, %v304_v12  ;;  %v703_v28 = vshrl.u32 %v1187_v52, %v697_v4 }
  0xdf   :  { %v309_v26 = vsel %vm299_vm4, %v306_v9, %v308_v20  ;;  %v313_v27 = vsel %vm299_vm4, %v310_v11, %v312_v21  ;;  %v701_v34 = vor.u32 %v700_v23, %v699_v19  ;;  %v705_v36 = vshll.u32 %v1187_v52, %v696_v48 }
  0xe0   :  { %v1313_v29 = vmul.u32.u64.low %v1279_v41, %v313_v27  ;;  %v1314_v30 = vmul.u32.u64.high %v1279_v41, %v313_v27, %v1313_v29  ;;  %v1317_v31 = vmul.u32.u64.low %v1279_v41, %v309_v26  ;;  %v1318_v33 = vmul.u32.u64.high %v1279_v41, %v309_v26, %v1317_v31 }
  0xe1   :  { %v704_v35 = vor.u32 %v703_v28, %v702_v24  ;;  %v706_v38 = vshrl.u32 %v1188_v54, %v697_v4  ;;  %v698_v39 = vshrl.u32 %v1185_v46, %v697_v4  ;;  %v708_v37 = vshll.u32 %v1188_v54, %v696_v48 }
  0xe2   :  { %v709_v45 = vshrl.u32 %v1189_v56, %v697_v4  ;;  %v712_v47 = vshrl.u32 %v1190_v63, %v697_v4  ;;  %v321_v51 = vmul.u32 %v1279_v41, %v305_v25  ;;  %v711_v55 = vshll.u32 %v1189_v56, %v696_v48 }
  0xe3   :  { %v707_v53 = vor.u32 %v706_v38, %v705_v36  ;;  %vm714_vm7 = vcmp.lt.s32.totalorder %v1281_v42, 1  ;;  %vm323_vm8 = vc.u32 %v1314_v30, %v1317_v31  ;;  %v324_v57 = vadd.s32 1, %v1318_v33 }
  0xe4   :  { %v710_v58 = vor.u32 %v709_v45, %v708_v37  ;;  %vm715_vm9 = vcmp.lt.s32.totalorder %v1281_v42, 2  ;;  %v713_v59 = vor.u32 %v712_v47, %v711_v55  ;;  %vm716_vm10 = vcmp.lt.s32.totalorder %v1281_v42, 3 }
  0xe5   :  { %vm717_vm11 = vcmp.lt.s32.totalorder %v1281_v42, 4  ;;  %v722_v60 = vsel %vm714_vm7, %v701_v34, %v704_v35  ;;  %v325_v41 = vsel %vm323_vm8, %v324_v57, %v1318_v33  ;;  %v726_v48 = vsel %vm714_vm7, %v704_v35, %v707_v53 }
  0xe6   :  { %v719_v61 = vsel %vm717_vm11, %v707_v53, 2102212464  ;;  %v723_v62 = vsel %vm717_vm11, %v710_v58, 920167782  ;;  %v326_v0 = vadd.s32 %v325_v41, %v321_v51  ;;  %v718_v1 = vsel %vm714_vm7, %v698_v39, %v701_v34 }
  0xe7   :  { %v724_v2 = vsel %vm716_vm10, %v707_v53, %v723_v62  ;;  %v727_v3 = vsel %vm717_vm11, %v713_v59, 1326507024  ;;  %v720_v4 = vsel %vm716_vm10, %v704_v35, %v719_v61  ;;  %v174_v17 = vsel %vm173_vm12, %v1290_v49, 0 }
  0xe8   :  { %v725_v5 = vsel %vm715_vm9, %v722_v60, %v724_v2  ;;  %v728_v6 = vsel %vm716_vm10, %v710_v58, %v727_v3  ;;  %v327_v7 = vadd.s32 536870912, %v326_v0  ;;  %v721_v20 = vsel %vm715_vm9, %v718_v1, %v720_v4 }
  0xe9   :  { %v729_v8 = vsel %vm715_vm9, %v726_v48, %v728_v6  ;;  %v1341_v9 = vmul.u32.u64.low %v1283_v43, %v725_v5  ;;  %v1342_v11 = vmul.u32.u64.high %v1283_v43, %v725_v5, %v1341_v9  ;;  %v176_v21 = vand.u32 31, %v174_v17 }
  0xea   :  { %v1346_v12 = vmul.u32.u64.low %v1283_v43, %v729_v8  ;;  %v1347_v15 = vmul.u32.u64.high %v1283_v43, %v729_v8, %v1346_v12  ;;  %v328_v19 = vshrl.u32 %v327_v7, 30  ;;  %v581_v23 = vand.u32 2139095040, %v1277_v40 }
  0xeb   :  { %v740_v25 = vadd.s32 1, %v1342_v11  ;;  %v170_v26 = vor.u32 8388608, %v1287_v44  ;;  %v737_v27 = vmul.u32 %v1283_v43, %v721_v20  ;;  %v177_v28 = vsub.s32 32, %v176_v21 }
  0xec   :  { %v329_v24 = vshll.u32 %v328_v19, 30  ;;  %vm739_vm13 = vc.u32 %v1347_v15, %v1341_v9  ;;  %v582_v42 = vshrl.u32 %v581_v23, 23  ;;  %v322_v34 = vadd.s32 %v1317_v31, %v1314_v30 }
  0xed   :  { %v741_v49 = vsel %vm739_vm13, %v740_v25, %v1342_v11  ;;  %v1364_v36 = vshll.u32 %v170_v26, 8  ;;  %v578_v43 = vand.u32 2147483647, %v1277_v40  ;;  %v1367_v38 = vshrl.u32 %v174_v17, 5 }
  0xee   :  { %v1358_v29 = vsub.s32 %v326_v0, %v329_v24  ;;  %v742_v33 = vadd.s32 %v741_v49, %v737_v27  ;;  %v180_v39 = vshrl.u32 %v1186_v50, %v177_v28  ;;  %v183_v37 = vshrl.u32 %v1187_v52, %v177_v28 }
  0xef   :  { %v186_v47 = vshrl.u32 %v1188_v54, %v177_v28  ;;  %v189_v51 = vshrl.u32 %v1189_v56, %v177_v28  ;;  %v1374_v30 = vadd.s32 4294967169, %v582_v42  ;;  %v352_v31 = vsub.s32 4, %v328_v19 }
  0xf0   :  { %v332_v35 = vsub.s32 0, %v1358_v29  ;;  %v743_v44 = vadd.s32 536870912, %v742_v33  ;;  %v179_v55 = vshll.u32 %v1185_v46, %v176_v21  ;;  %v182_v57 = vshll.u32 %v1186_v50, %v176_v21 }
  0xf1   :  { %v185_v60 = vshll.u32 %v1187_v52, %v176_v21  ;;  %v188_v41 = vshll.u32 %v1188_v54, %v176_v21  ;;  %v192_v61 = vshrl.u32 %v1190_v63, %v177_v28  ;;  %v1392_v1 = vand.u32 8388607, %v578_v43 }
  0xf2   :  { %v1032_v45 = vmin.u32 %v332_v35, %v1358_v29  ;;  %v1376_v53 = vshrl.u32 %v743_v44, 30  ;;  %v181_v48 = vor.u32 %v180_v39, %v179_v55  ;;  %v184_v0 = vor.u32 %v183_v37, %v182_v57 }
  0xf3   :  { %v187_v16 = vor.u32 %v186_v47, %v185_v60  ;;  %v190_v3 = vor.u32 %v189_v51, %v188_v41  ;;  %v191_v4 = vshll.u32 %v1189_v56, %v176_v21  ;;  %v353_v5 = vsel %vm268_vm14, %v352_v31, %v328_v19 }
  0xf4   :  { %v334_v59 = vclz %v1032_v45  ;;  %v745_v62 = vshll.u32 %v1376_v53, 30  ;;  %v178_v7 = vshrl.u32 %v1185_v46, %v177_v28  ;;  %vm194_vm0 = vcmp.lt.s32.totalorder %v1367_v38, 1 }
  0xf5   :  { %v193_v8 = vor.u32 %v192_v61, %v191_v4  ;;  %vm195_vm2 = vcmp.lt.s32.totalorder %v1367_v38, 2  ;;  %vm196_vm3 = vcmp.lt.s32.totalorder %v1367_v38, 3  ;;  %vm684_vm4 = vcmp.lt.s32.totalorder %v1261_v14, 0 }
  0xf6   :  { %v1033_v2 = vadd.s32 4294967294, %v334_v59  ;;  %v1397_v6 = vsub.s32 %v742_v33, %v745_v62  ;;  %vm197_vm5 = vcmp.lt.s32.totalorder %v1367_v38, 4  ;;  %v202_v17 = vsel %vm194_vm0, %v181_v48, %v184_v0 }
  0xf7   :  { %v199_v21 = vsel %vm197_vm5, %v187_v16, 2102212464  ;;  %v203_v23 = vsel %vm197_vm5, %v190_v3, 920167782  ;;  %v206_v27 = vsel %vm194_vm0, %v184_v0, %v187_v16  ;;  %v207_v33 = vsel %vm197_vm5, %v193_v8, 1326507024 }
  0xf8   :  { %vm1034_vm1 = vcmp.lt.s32.totalorder %v1033_v2, 0  ;;  %v748_v12 = vsub.s32 0, %v1397_v6  ;;  %v204_v26 = vsel %vm196_vm3, %v187_v16, %v203_v23  ;;  %v355_v35 = vsel %vm1382_vm15, 0, %v353_v5 }
  0xf9   :  { %v337_v11 = vsel %vm1034_vm1, 0, %v1033_v2  ;;  %v205_v42 = vsel %vm195_vm2, %v202_v17, %v204_v26  ;;  %vm1420_vm6 = vcmp.le.f32.partialorder %v682_v18, 0.7853982  ;;  %v198_v39 = vsel %vm194_vm0, %v178_v7, %v181_v48 }
  0xfa   :  { %v338_v19 = vsub.s32 32, %v337_v11  ;;  %v342_v20 = vsub.s32 4294967266, %v337_v11  ;;  %v339_v24 = vshll.u32 %v1358_v29, %v337_v11  ;;  %v1048_v25 = vmin.u32 %v748_v12, %v1397_v6 }
  0xfb   :  { %v768_v47 = vsub.s32 4, %v1376_v53  ;;  %v208_v51 = vsel %vm196_vm3, %v190_v3, %v207_v33  ;;  %v1434_v55 = vmul.u32.u64.low %v1364_v36, %v205_v42  ;;  %v1435_v57 = vmul.u32.u64.high %v1364_v36, %v205_v42, %v1434_v55 }
  0xfc   :  { %v340_v28 = vshrl.u32 %v322_v34, %v338_v19  ;;  %v343_v49 = vadd.s32 127, %v342_v20  ;;  %v750_v44 = vclz %v1048_v25  ;;  %v200_v34 = vsel %vm196_vm3, %v184_v0, %v199_v21  ;;  %v1078_v19 = vpop.f32.mrf.mxu0 }
  0xfd   :  { %v209_v18 = vsel %vm195_vm2, %v206_v27, %v208_v51  ;;  %v201_v60 = vsel %vm195_vm2, %v198_v39, %v200_v34  ;;  %v359_v62 = vadd.s32 3, %v355_v35  ;;  %v738_v48 = vadd.s32 %v1341_v9, %v1347_v15 }
  0xfe   :  { %v341_v37 = vor.u32 %v340_v28, %v339_v24  ;;  %v344_v45 = vshll.u32 %v343_v49, 23  ;;  %v1049_v31 = vadd.s32 4294967294, %v750_v44  ;;  %v588_v0 = vadd.s32 1, %v1374_v30 }
  0xff   :  { %v1441_v41 = vmul.u32.u64.low %v1364_v36, %v209_v18  ;;  %v1442_v61 = vmul.u32.u64.high %v1364_v36, %v209_v18, %v1441_v41  ;;  %v769_v4 = vsel %vm684_vm4, %v768_v47, %v1376_v53  ;;  %v217_v7 = vmul.u32 %v1364_v36, %v201_v60 }
 0x100   :  { %v345_v59 = vor.u32 4788187, %v344_v45  ;;  %vm1050_vm7 = vcmp.lt.s32.totalorder %v1049_v31, 0  ;;  %v348_v16 = vcvt.s32.f32 %v341_v37  ;;  %v220_v8 = vadd.s32 1, %v1435_v57 }
 0x101   :  { %v753_v3 = vsel %vm1050_vm7, 0, %v1049_v31  ;;  %vm219_vm8 = vc.u32 %v1442_v61, %v1434_v55  ;;  %vm589_vm9 = vcmp.gt.s32.totalorder %v588_v0, 0  ;;  %v771_v20 = vsel %vm1420_vm6, 0, %v769_v4 }
 0x102   :  { %v346_v2 = vand.u32 2147483647, %v345_v59  ;;  %v754_v38 = vsub.s32 32, %v753_v3  ;;  %v758_v5 = vsub.s32 4294967266, %v753_v3  ;;  %v755_v12 = vshll.u32 %v1397_v6, %v753_v3 }
 0x103   :  { %v221_v30 = vsel %vm219_vm8, %v220_v8, %v1435_v57  ;;  %v590_v17 = vsel %vm589_vm9, %v588_v0, 0  ;;  %v1461_v27 = vadd.f32 %v1078_v19, %v1255_v10  ;;  %v1466_v49 = vand.u32 3, %v359_v62 }
 0x104   :  { %v349_v11 = vmul.f32 %v348_v16, %v346_v2  ;;  %v756_v9 = vshrl.u32 %v738_v48, %v754_v38  ;;  %v759_v15 = vadd.s32 127, %v758_v5  ;;  %v222_v36 = vadd.s32 %v221_v30, %v217_v7 }
 0x105   :  { %v592_v21 = vand.u32 31, %v590_v17  ;;  %v1468_v33 = vadd.s32 3, %v771_v20  ;;  %v586_v44 = vor.u32 8388608, %v1392_v1  ;;  %vm164_vm10 = vcmp.lt.s32.totalorder %v1270_v22, 0 }
 0x106   :  { %v350_v53 = vxor.u32 2147483648, %v349_v11  ;;  %v757_v23 = vor.u32 %v756_v9, %v755_v12  ;;  %v760_v24 = vshll.u32 %v759_v15, 23  ;;  %v223_v25 = vadd.s32 536870912, %v222_v36 }
 0x107   :  { %v593_v26 = vsub.s32 32, %v592_v21  ;;  %v1474_v47 = vshrl.u32 %v590_v17, 5  ;;  %v595_v51 = vshll.u32 %v1185_v46, %v592_v21  ;;  %v598_v57 = vshll.u32 %v1186_v50, %v592_v21 }
 0x108   :  { %v351_v6 = vsel %vm268_vm14, %v350_v53, %v349_v11  ;;  %v761_v42 = vor.u32 4788187, %v760_v24  ;;  %v224_v35 = vshrl.u32 %v223_v25, 30  ;;  %v764_v37 = vcvt.s32.f32 %v757_v23 }
 0x109   :  { %v354_v28 = vsel %vm1382_vm15, %v1258_v13, %v351_v6  ;;  %v596_v39 = vshrl.u32 %v1186_v50, %v593_v26  ;;  %v599_v45 = vshrl.u32 %v1187_v52, %v593_v26  ;;  %v602_v31 = vshrl.u32 %v1188_v54, %v593_v26 }
 0x10a   :  { %1130 = vcosq.f32 %v354_v28  ;;  %v762_v34 = vand.u32 2147483647, %v761_v42  ;;  %v225_v58 = vshll.u32 %v224_v35, 30  ;;  %v604_v1 = vshll.u32 %v1188_v54, %v592_v21 }
 0x10b   :  { %1132 = vsinq.f32 %v354_v28  ;;  %v605_v59 = vshrl.u32 %v1189_v56, %v593_v26  ;;  %v597_v41 = vor.u32 %v596_v39, %v595_v51  ;;  %v601_v62 = vshll.u32 %v1187_v52, %v592_v21 }
 0x10c   :  { %v765_v18 = vmul.f32 %v764_v37, %v762_v34  ;;  %v1481_v60 = vsub.s32 %v222_v36, %v225_v58  ;;  %v477_v48 = vand.u32 2139095040, %v1461_v27  ;;  %v600_v2 = vor.u32 %v599_v45, %v598_v57 }
 0x10d   :  { %v606_v16 = vor.u32 %v605_v59, %v604_v1  ;;  %v608_v3 = vshrl.u32 %v1190_v63, %v593_v26  ;;  %v218_v4 = vadd.s32 %v1434_v55, %v1442_v61  ;;  %v603_v5 = vor.u32 %v602_v31, %v601_v62 }
 0x10e   :  { %v766_v0 = vxor.u32 2147483648, %v765_v18  ;;  %v228_v38 = vsub.s32 0, %v1481_v60  ;;  %v607_v7 = vshll.u32 %v1189_v56, %v592_v21  ;;  %vm365_vm11 = vcmp.eq.s32.totalorder %v1466_v49, 2 }
 0x10f   :  { %v248_v11 = vsub.s32 4, %v224_v35  ;;  %vm610_vm12 = vcmp.lt.s32.totalorder %v1474_v47, 1  ;;  %v626_v12 = vshll.u32 %v586_v44, 8  ;;  %vm362_vm13 = vcmp.eq.s32.totalorder %v1466_v49, 0 }
 0x110   :  { %v767_v8 = vsel %vm684_vm4, %v766_v0, %v765_v18  ;;  %v1028_v61 = vmin.u32 %v228_v38, %v1481_v60  ;;  %v609_v9 = vor.u32 %v608_v3, %v607_v7  ;;  %vm613_vm14 = vcmp.lt.s32.totalorder %v1474_v47, 4 }
 0x111   :  { %v770_v55 = vsel %vm1420_vm6, %v1261_v14, %v767_v8  ;;  %vm361_vm15 = vcmp.lt.s32.totalorder %v1466_v49, 2  ;;  %v594_v15 = vshrl.u32 %v1185_v46, %v593_v26  ;;  %v618_v30 = vsel %vm610_vm12, %v597_v41, %v600_v2 }
 0x112   :  { %1134 = vcosq.f32 %v770_v55  ;;  %v619_v17 = vsel %vm613_vm14, %v606_v16, 920167782  ;;  %vm358_vm0 = vweird.f32 %v1258_v13  ;;  %vm1509_vm1 = vcmp.le.f32.partialorder %v162_v32, 0.7853982 }
 0x113   :  { %1136 = vsinq.f32 %v770_v55  ;;  %v230_v19 = vclz %v1028_v61  ;;  %vm612_vm2 = vcmp.lt.s32.totalorder %v1474_v47, 3  ;;  %v615_v53 = vsel %vm613_vm14, %v603_v5, 2102212464 }
 0x114   :  { %v249_v20 = vsel %vm164_vm10, %v248_v11, %v224_v35  ;;  %vm611_vm3 = vcmp.lt.s32.totalorder %v1474_v47, 2  ;;  %v620_v36 = vsel %vm612_vm2, %v603_v5, %v619_v17  ;;  %v622_v21 = vsel %vm610_vm12, %v600_v2, %v603_v5 }
 0x115   :  { %v1029_v23 = vadd.s32 4294967294, %v230_v19  ;;  %v614_v32 = vsel %vm610_vm12, %v594_v15, %v597_v41  ;;  %v621_v24 = vsel %vm611_vm3, %v618_v30, %v620_v36  ;;  %v623_v6 = vsel %vm613_vm14, %v609_v9, 1326507024 }
 0x116   :  { %v616_v26 = vsel %vm612_vm2, %v600_v2, %v615_v53  ;;  %v624_v28 = vsel %vm612_vm2, %v606_v16, %v623_v6  ;;  %v1527_v42 = vmul.u32.u64.low %v626_v12, %v621_v24  ;;  %v1528_v35 = vmul.u32.u64.high %v626_v12, %v621_v24, %v1527_v42 }
 0x117   :  { %v1131_v25 = vpop.eup %1130  ;;  %vm1030_vm4 = vcmp.lt.s32.totalorder %v1029_v23, 0  ;;  %v625_v34 = vsel %vm611_vm3, %v622_v21, %v624_v28  ;;  %v478_v37 = vshrl.u32 %v477_v48, 23  ;;  %v617_v59 = vsel %vm611_vm3, %v614_v32, %v616_v26 }
 0x118   :  { %v1133_v44 = vpop.eup %1132  ;;  %v366_v39 = vxor.u32 2147483648, %v1131_v25  ;;  %v233_v58 = vsel %vm1030_vm4, 0, %v1029_v23  ;;  %v1533_v51 = vmul.u32.u64.low %v626_v12, %v625_v34  ;;  %v1534_v31 = vmul.u32.u64.high %v626_v12, %v625_v34, %v1533_v51 }
 0x119   :  { %v363_v45 = vxor.u32 2147483648, %v1133_v44  ;;  %v234_v57 = vsub.s32 32, %v233_v58  ;;  %v238_v1 = vsub.s32 4294967266, %v233_v58  ;;  %v776_v62 = vand.u32 3, %v1468_v33  ;;  %v1084_v33 = vpop.f32.mrf.mxu1 }
 0x11a   :  { %v367_v18 = vsel %vm365_vm11, %v366_v39, %v1133_v44  ;;  %v636_v48 = vadd.s32 1, %v1528_v35  ;;  %v1039_v0 = vadd.s32 4294967169, %v478_v37  ;;  %v235_v16 = vshll.u32 %v1481_v60, %v233_v58 }
 0x11b   :  { %v364_v41 = vsel %vm362_vm13, %v1131_v25, %v363_v45  ;;  %v236_v3 = vshrl.u32 %v218_v4, %v234_v57  ;;  %v239_v38 = vadd.s32 127, %v238_v1  ;;  %v251_v47 = vsel %vm1509_vm1, 0, %v249_v20 }
 0x11c   :  { %v368_v2 = vsel %vm361_vm15, %v364_v41, %v367_v18  ;;  %v633_v7 = vmul.u32 %v626_v12, %v617_v59  ;;  %vm635_vm5 = vc.u32 %v1534_v31, %v1527_v42  ;;  %v484_v55 = vadd.s32 1, %v1039_v0 }
 0x11d   :  { %v369_v5 = vsel %vm358_vm0, nan, %v368_v2  ;;  %v237_v8 = vor.u32 %v236_v3, %v235_v16  ;;  %v240_v11 = vshll.u32 %v239_v38, 23  ;;  %v637_v49 = vsel %vm635_vm5, %v636_v48, %v1528_v35 }
 0x11e   :  { %995 = vst [vmem:[#allocation2 + $0x8] sm:$0xff] %v369_v5  ;;  %v638_v60 = vadd.s32 %v637_v49, %v633_v7  ;;  %v474_v4 = vand.u32 2147483647, %v1461_v27  ;;  %vm781_vm6 = vcmp.eq.s32.totalorder %v776_v62, 2  ;;  %vm485_vm7 = vcmp.gt.s32.totalorder %v484_v55, 0 }
 0x11f   :  { %v1135_v61 = vpop.eup %1134  ;;  %v241_v13 = vor.u32 4788187, %v240_v11  ;;  %v1556_v9 = vadd.f32 %v1084_v33, %v1255_v10  ;;  %v255_v30 = vadd.s32 3, %v251_v47  ;;  %v486_v19 = vsel %vm485_vm7, %v484_v55, 0 }
 0x120   :  { %v1137_v12 = vpop.eup %1136  ;;  %v782_v15 = vxor.u32 2147483648, %v1135_v61  ;;  %v639_v17 = vadd.s32 536870912, %v638_v60  ;;  %v244_v36 = vcvt.s32.f32 %v237_v8  ;;  %v488_v21 = vand.u32 31, %v486_v19 }
 0x121   :  { %v779_v53 = vxor.u32 2147483648, %v1137_v12  ;;  %v242_v20 = vand.u32 2147483647, %v241_v13  ;;  %vm778_vm8 = vcmp.eq.s32.totalorder %v776_v62, 0  ;;  %v481_v24 = vand.u32 8388607, %v474_v4 }
 0x122   :  { %v783_v23 = vsel %vm781_vm6, %v782_v15, %v1137_v12  ;;  %v1558_v32 = vshrl.u32 %v639_v17, 30  ;;  %vm777_vm9 = vcmp.lt.s32.totalorder %v776_v62, 2  ;;  %v489_v26 = vsub.s32 32, %v488_v21 }
 0x123   :  { %v780_v6 = vsel %vm778_vm8, %v1135_v61, %v779_v53  ;;  %v245_v25 = vmul.f32 %v244_v36, %v242_v20  ;;  %vm774_vm11 = vweird.f32 %v1261_v14  ;;  %v1564_v34 = vand.u32 3, %v255_v30 }
 0x124   :  { %v784_v28 = vsel %vm777_vm9, %v780_v6, %v783_v23  ;;  %v641_v35 = vshll.u32 %v1558_v32, 30  ;;  %v492_v37 = vshrl.u32 %v1186_v50, %v489_v26  ;;  %v482_v58 = vor.u32 8388608, %v481_v24 }
 0x125   :  { %v785_v44 = vsel %vm774_vm11, nan, %v784_v28  ;;  %v246_v39 = vxor.u32 2147483648, %v245_v25  ;;  %v495_v51 = vshrl.u32 %v1187_v52, %v489_v26  ;;  %v893_v18 = vand.u32 2139095040, %v1556_v9 }
 0x126   :  { %999 = vst [vmem:[#allocation2 + $0x28] sm:$0xff] %v785_v44  ;;  %v1567_v45 = vsub.s32 %v638_v60, %v641_v35  ;;  %v487_v57 = vshrl.u32 %v486_v19, 5  ;;  %v491_v1 = vshll.u32 %v1185_v46, %v488_v21  ;;  %v498_v59 = vshrl.u32 %v1188_v54, %v489_v26 }
 0x127   :  { %v247_v14 = vsel %vm164_vm10, %v246_v39, %v245_v25  ;;  %v494_v48 = vshll.u32 %v1186_v50, %v488_v21  ;;  %v497_v0 = vshll.u32 %v1187_v52, %v488_v21  ;;  %v500_v16 = vshll.u32 %v1188_v54, %v488_v21 }
 0x128   :  { %v250_v41 = vsel %vm1509_vm1, %v1270_v22, %v247_v14  ;;  %v644_v62 = vsub.s32 0, %v1567_v45  ;;  %v493_v2 = vor.u32 %v492_v37, %v491_v1  ;;  %v501_v3 = vshrl.u32 %v1189_v56, %v489_v26 }
 0x129   :  { %1138 = vcosq.f32 %v250_v41  ;;  %v496_v5 = vor.u32 %v495_v51, %v494_v48  ;;  %v499_v47 = vor.u32 %v498_v59, %v497_v0  ;;  %v503_v29 = vshll.u32 %v1189_v56, %v488_v21 }
 0x12a   :  { %1140 = vsinq.f32 %v250_v41  ;;  %v1044_v38 = vmin.u32 %v644_v62, %v1567_v45  ;;  %v502_v7 = vor.u32 %v501_v3, %v500_v16  ;;  %v504_v33 = vshrl.u32 %v1190_v63, %v489_v26 }
 0x12b   :  { %v522_v8 = vshll.u32 %v482_v58, 8  ;;  %v490_v49 = vshrl.u32 %v1185_v46, %v489_v26  ;;  %vm506_vm10 = vcmp.lt.s32.totalorder %v487_v57, 1  ;;  %v894_v55 = vshrl.u32 %v893_v18, 23 }
 0x12c   :  { %v646_v11 = vclz %v1044_v38  ;;  %v505_v60 = vor.u32 %v504_v33, %v503_v29  ;;  %vm507_vm12 = vcmp.lt.s32.totalorder %v487_v57, 2  ;;  %vm508_vm13 = vcmp.lt.s32.totalorder %v487_v57, 3 }
 0x12d   :  { %vm509_vm14 = vcmp.lt.s32.totalorder %v487_v57, 4  ;;  %v514_v12 = vsel %vm506_vm10, %v493_v2, %v496_v5  ;;  %v510_v30 = vsel %vm506_vm10, %v490_v49, %v493_v2  ;;  %v518_v19 = vsel %vm506_vm10, %v496_v5, %v499_v47 }
 0x12e   :  { %v1045_v61 = vadd.s32 4294967294, %v646_v11  ;;  %v511_v13 = vsel %vm509_vm14, %v499_v47, 2102212464  ;;  %v515_v15 = vsel %vm509_vm14, %v502_v7, 920167782  ;;  %vm580_vm0 = vcmp.lt.s32.totalorder %v1277_v40, 0 }
 0x12f   :  { %v516_v17 = vsel %vm508_vm13, %v499_v47, %v515_v15  ;;  %v519_v53 = vsel %vm509_vm14, %v505_v60, 1326507024  ;;  %v512_v20 = vsel %vm508_vm13, %v496_v5, %v511_v13  ;;  %v634_v26 = vadd.s32 %v1527_v42, %v1534_v31 }
 0x130   :  { %vm1046_vm15 = vcmp.lt.s32.totalorder %v1045_v61, 0  ;;  %v517_v36 = vsel %vm507_vm12, %v514_v12, %v516_v17  ;;  %v520_v21 = vsel %vm508_vm13, %v502_v7, %v519_v53  ;;  %v890_v37 = vand.u32 2147483647, %v1556_v9 }
 0x131   :  { %v649_v23 = vsel %vm1046_vm15, 0, %v1045_v61  ;;  %v521_v24 = vsel %vm507_vm12, %v518_v19, %v520_v21  ;;  %v1589_v6 = vmul.u32.u64.low %v522_v8, %v517_v36  ;;  %v1590_v25 = vmul.u32.u64.high %v522_v8, %v517_v36, %v1589_v6 }
 0x132   :  { %v650_v28 = vsub.s32 32, %v649_v23  ;;  %v654_v35 = vsub.s32 4294967266, %v649_v23  ;;  %v1596_v44 = vmul.u32.u64.low %v522_v8, %v521_v24  ;;  %v1597_v39 = vmul.u32.u64.high %v522_v8, %v521_v24, %v1596_v44 }
 0x133   :  { %v1055_v58 = vadd.s32 4294967169, %v894_v55  ;;  %v651_v51 = vshll.u32 %v1567_v45, %v649_v23  ;;  %v513_v1 = vsel %vm507_vm12, %v510_v30, %v512_v20  ;;  %vm257_vm1 = vcmp.lt.s32.totalorder %v1564_v34, 2  ;;  %v133_v55 = vpop.f32.mrf.mxu0 }
 0x134   :  { %v652_v18 = vshrl.u32 %v634_v26, %v650_v28  ;;  %v655_v14 = vadd.s32 127, %v654_v35  ;;  %v664_v59 = vsub.s32 4, %v1558_v32  ;;  %v532_v42 = vadd.s32 1, %v1590_v25 }
 0x135   :  { %v900_v31 = vadd.s32 1, %v1055_v58  ;;  %vm258_vm2 = vcmp.eq.s32.totalorder %v1564_v34, 0  ;;  %vm261_vm3 = vcmp.eq.s32.totalorder %v1564_v34, 2  ;;  %v529_v2 = vmul.u32 %v522_v8, %v513_v1 }
 0x136   :  { %v1139_v41 = vpop.eup %1138  ;;  %v653_v62 = vor.u32 %v652_v18, %v651_v51  ;;  %v656_v48 = vshll.u32 %v655_v14, 23  ;;  %vm531_vm4 = vc.u32 %v1597_v39, %v1589_v6  ;;  %v897_v38 = vand.u32 8388607, %v890_v37 }
 0x137   :  { %v1141_v0 = vpop.eup %1140  ;;  %v262_v45 = vxor.u32 2147483648, %v1139_v41  ;;  %vm901_vm5 = vcmp.gt.s32.totalorder %v900_v31, 0  ;;  %v533_v3 = vsel %vm531_vm4, %v532_v42, %v1590_v25  ;;  %v665_v47 = vsel %vm580_vm0, %v664_v59, %v1558_v32 }
 0x138   :  { %v259_v57 = vxor.u32 2147483648, %v1141_v0  ;;  %v657_v16 = vor.u32 4788187, %v656_v48  ;;  %v534_v7 = vadd.s32 %v533_v3, %v529_v2  ;;  %v902_v29 = vsel %vm901_vm5, %v900_v31, 0 }
 0x139   :  { %v263_v5 = vsel %vm261_vm3, %v262_v45, %v1141_v0  ;;  %v660_v11 = vcvt.s32.f32 %v653_v62  ;;  %v904_v49 = vand.u32 31, %v902_v29  ;;  %vm254_vm6 = vweird.f32 %v1270_v22 }
 0x13a   :  { %v260_v33 = vsel %vm258_vm2, %v1139_v41, %v259_v57  ;;  %v658_v8 = vand.u32 2147483647, %v657_v16  ;;  %vm1622_vm7 = vcmp.le.f32.partialorder %v578_v43, 0.7853982  ;;  %v535_v32 = vadd.s32 536870912, %v534_v7 }
 0x13b   :  { %v264_v60 = vsel %vm257_vm1, %v260_v33, %v263_v5  ;;  %v667_v15 = vsel %vm1622_vm7, 0, %v665_v47  ;;  %v905_v30 = vsub.s32 32, %v904_v49  ;;  %v898_v22 = vor.u32 8388608, %v897_v38 }
 0x13c   :  { %v265_v13 = vsel %vm254_vm6, nan, %v264_v60  ;;  %v661_v12 = vmul.f32 %v660_v11, %v658_v8  ;;  %v1628_v17 = vshrl.u32 %v535_v32, 30  ;;  %v907_v34 = vshll.u32 %v1185_v46, %v904_v49 }
 0x13d   :  { %994 = vst [vmem:[#allocation2] sm:$0xff] %v265_v13  ;;  %v1632_v19 = vadd.f32 %v1255_v10, %v133_v55  ;;  %v908_v53 = vshrl.u32 %v1186_v50, %v905_v30  ;;  %v910_v20 = vshll.u32 %v1186_v50, %v904_v49  ;;  %v911_v36 = vshrl.u32 %v1187_v52, %v905_v30 }
 0x13e   :  { %v662_v43 = vxor.u32 2147483648, %v661_v12  ;;  %v537_v21 = vshll.u32 %v1628_v17, 30  ;;  %v913_v23 = vshll.u32 %v1187_v52, %v904_v49  ;;  %v914_v24 = vshrl.u32 %v1188_v54, %v905_v30 }
 0x13f   :  { %v917_v25 = vshrl.u32 %v1189_v56, %v905_v30  ;;  %v903_v10 = vshrl.u32 %v902_v29, 5  ;;  %v909_v28 = vor.u32 %v908_v53, %v907_v34  ;;  %v916_v35 = vshll.u32 %v1188_v54, %v904_v49 }
 0x140   :  { %v663_v26 = vsel %vm580_vm0, %v662_v43, %v661_v12  ;;  %v1647_v58 = vsub.s32 %v534_v7, %v537_v21  ;;  %v912_v51 = vor.u32 %v911_v36, %v910_v20  ;;  %v915_v18 = vor.u32 %v914_v24, %v913_v23 }
 0x141   :  { %v666_v44 = vsel %vm1622_vm7, %v1277_v40, %v663_v26  ;;  %v918_v14 = vor.u32 %v917_v25, %v916_v35  ;;  %v919_v1 = vshll.u32 %v1189_v56, %v904_v49  ;;  %v920_v59 = vshrl.u32 %v1190_v63, %v905_v30 }
 0x142   :  { %1142 = vcosq.f32 %v666_v44  ;;  %v540_v42 = vsub.s32 0, %v1647_v58  ;;  %v671_v31 = vadd.s32 3, %v667_v15  ;;  %vm925_vm8 = vcmp.lt.s32.totalorder %v903_v10, 4 }
 0x143   :  { %1144 = vsinq.f32 %v666_v44  ;;  %v921_v41 = vor.u32 %v920_v59, %v919_v1  ;;  %v373_v62 = vand.u32 2139095040, %v1632_v19  ;;  %v906_v0 = vshrl.u32 %v1185_v46, %v905_v30 }
 0x144   :  { %v1040_v48 = vmin.u32 %v540_v42, %v1647_v58  ;;  %vm922_vm9 = vcmp.lt.s32.totalorder %v903_v10, 1  ;;  %v927_v45 = vsel %vm925_vm8, %v915_v18, 2102212464  ;;  %vm923_vm11 = vcmp.lt.s32.totalorder %v903_v10, 2 }
 0x145   :  { %v930_v2 = vsel %vm922_vm9, %v909_v28, %v912_v51  ;;  %v931_v57 = vsel %vm925_vm8, %v918_v14, 920167782  ;;  %v938_v16 = vshll.u32 %v898_v22, 8  ;;  %vm924_vm10 = vcmp.lt.s32.totalorder %v903_v10, 3 }
 0x146   :  { %v542_v3 = vclz %v1040_v48  ;;  %v926_v38 = vsel %vm922_vm9, %v906_v0, %v909_v28  ;;  %v934_v5 = vsel %vm922_vm9, %v912_v51, %v915_v18  ;;  %v928_v47 = vsel %vm924_vm10, %v912_v51, %v927_v45  ;;  %v153_v28 = vpop.f32.mrf.mxu1 }
 0x147   :  { %v932_v7 = vsel %vm924_vm10, %v915_v18, %v931_v57  ;;  %v935_v29 = vsel %vm925_vm8, %v921_v41, 1326507024  ;;  %v374_v33 = vshrl.u32 %v373_v62, 23  ;;  %v672_v8 = vand.u32 3, %v671_v31  ;;  %v1162_v31 = vld [vmem:[%s1804_s2] ss:$0 sm:$0xff] }
 0x148   :  { %v1041_v11 = vadd.s32 4294967294, %v542_v3  ;;  %v933_v49 = vsel %vm923_vm11, %v930_v2, %v932_v7  ;;  %v936_v55 = vsel %vm924_vm10, %v918_v14, %v935_v29  ;;  %v929_v12 = vsel %vm923_vm11, %v926_v38, %v928_v47  ;;  %s1191_s2 = smov [#allocation2]  }
 0x149   :  { %v937_v60 = vsel %vm923_vm11, %v934_v5, %v936_v55  ;;  %v1660_v61 = vmul.u32.u64.low %v938_v16, %v933_v49  ;;  %v1661_v32 = vmul.u32.u64.high %v938_v16, %v933_v49, %v1660_v61  ;;  %v1035_v13 = vadd.s32 4294967169, %v374_v33  ;;  %s1007_s7 = sshll.u32 %s1191_s2, 4  ;;  %s1008_s7 = int_to_ptr.vmem [resolvable:$true] %s1007_s7 }
 0x14a   :  { %vm1042_vm12 = vcmp.lt.s32.totalorder %v1041_v11, 0  ;;  %v1665_v15 = vmul.u32.u64.low %v938_v16, %v937_v60  ;;  %v1666_v30 = vmul.u32.u64.high %v938_v16, %v937_v60, %v1665_v15  ;;  %v370_v34 = vand.u32 2147483647, %v1632_v19  ;;  %s1163_s8 = scalar_lea.vmem %s1008_s7, 1024  ;;  %p1168_p1 = scmp.lt.s32.totalorder %s1008_s7, %s1008_s7 }
 0x14b   :  { %v545_v22 = vsel %vm1042_vm12, 0, %v1041_v11  ;;  %v380_v43 = vadd.s32 1, %v1035_v13  ;;  %vm670_vm13 = vweird.f32 %v1277_v40  ;;  %v530_v53 = vadd.s32 %v1589_v6, %v1597_v39  ;;  %p1164_p0 = scmp.ne.s32.totalorder %s1008_s7, %s1163_s8  ;;  %p1169_p2 = scmp.lt.s32.totalorder %s1163_s8, %s1163_s8 }
 0x14c   :  { %v546_v20 = vsub.s32 32, %v545_v22  ;;  %v550_v36 = vsub.s32 4294967266, %v545_v22  ;;  %vm677_vm14 = vcmp.eq.s32.totalorder %v672_v8, 2  ;;  %v945_v21 = vmul.u32 %v938_v16, %v929_v12 }
 0x14d   :  { %v948_v23 = vadd.s32 1, %v1661_v32  ;;  %vm381_vm15 = vcmp.gt.s32.totalorder %v380_v43, 0  ;;  %v547_v25 = vshll.u32 %v1647_v58, %v545_v22  ;;  %vm947_vm0 = vc.u32 %v1666_v30, %v1660_v61  ;;  %p1170_p3 = por %p1169_p2, %p1168_p1 }
 0x14e   :  { %v548_v26 = vshrl.u32 %v530_v53, %v546_v20  ;;  %v551_v10 = vadd.s32 127, %v550_v36  ;;  %v377_v39 = vand.u32 8388607, %v370_v34  ;;  %v382_v51 = vsel %vm381_vm15, %v380_v43, 0 }
 0x14f   :  { %v1143_v24 = vpop.eup %1142  ;;  %v949_v6 = vsel %vm947_vm0, %v948_v23, %v1661_v32  ;;  %vm674_vm1 = vcmp.eq.s32.totalorder %v672_v8, 0  ;;  %vm476_vm2 = vcmp.lt.s32.totalorder %v1461_v27, 0  ;;  %v384_v42 = vand.u32 31, %v382_v51  ;;  %p1171_p4 = pnand %p1170_p3, %p1164_p0 }
 0x150   :  { %v1145_v35 = vpop.eup %1144  ;;  %v678_v44 = vxor.u32 2147483648, %v1143_v24  ;;  %v549_v14 = vor.u32 %v548_v26, %v547_v25  ;;  %v552_v1 = vshll.u32 %v551_v10, 23  ;;  %v950_v59 = vadd.s32 %v949_v6, %v945_v21 }
 0x151   :  { %v675_v18 = vxor.u32 2147483648, %v1145_v35  ;;  %v1684_v41 = vadd.f32 %v1162_v31, %v153_v28  ;;  %vm673_vm3 = vcmp.lt.s32.totalorder %v672_v8, 2  ;;  %vm1688_vm4 = vcmp.le.f32.partialorder %v474_v4, 0.7853982 }
 0x152   :  { %v679_v58 = vsel %vm677_vm14, %v678_v44, %v1145_v35  ;;  %v553_v0 = vor.u32 4788187, %v552_v1  ;;  %v951_v45 = vadd.s32 536870912, %v950_v59  ;;  %v560_v57 = vsub.s32 4, %v1628_v17 }
 0x153   :  { %v676_v62 = vsel %vm674_vm1, %v1143_v24, %v675_v18  ;;  %v378_v16 = vor.u32 8388608, %v377_v39  ;;  %v385_v3 = vsub.s32 32, %v384_v42  ;;  %v556_v47 = vcvt.s32.f32 %v549_v14 }
 0x154   :  { %v680_v2 = vsel %vm673_vm3, %v676_v62, %v679_v58  ;;  %v554_v5 = vand.u32 2147483647, %v553_v0  ;;  %v1695_v7 = vshrl.u32 %v951_v45, 30  ;;  %v789_v8 = vand.u32 2139095040, %v1684_v41 }
 0x155   :  { %v681_v38 = vsel %vm670_vm13, nan, %v680_v2  ;;  %v388_v4 = vshrl.u32 %v1186_v50, %v385_v3  ;;  %v391_v29 = vshrl.u32 %v1187_v52, %v385_v3  ;;  %v394_v33 = vshrl.u32 %v1188_v54, %v385_v3 }
 0x156   :  { %998 = vst [vmem:[#allocation2 + $0x20] sm:$0xff] %v681_v38  ;;  %v557_v11 = vmul.f32 %v556_v47, %v554_v5  ;;  %v953_v49 = vshll.u32 %v1695_v7, 30  ;;  %v387_v55 = vshll.u32 %v1185_v46, %v384_v42  ;;  %v390_v40 = vshll.u32 %v1186_v50, %v384_v42 }
 0x157   :  { %v383_v60 = vshrl.u32 %v382_v51, 5  ;;  %v393_v32 = vshll.u32 %v1187_v52, %v384_v42  ;;  %v396_v13 = vshll.u32 %v1188_v54, %v384_v42  ;;  %v397_v12 = vshrl.u32 %v1189_v56, %v385_v3 }
 0x158   :  { %v558_v15 = vxor.u32 2147483648, %v557_v11  ;;  %v954_v22 = vsub.s32 %v950_v59, %v953_v49  ;;  %v389_v43 = vor.u32 %v388_v4, %v387_v55  ;;  %v392_v53 = vor.u32 %v391_v29, %v390_v40 }
 0x159   :  { %v395_v20 = vor.u32 %v394_v33, %v393_v32  ;;  %v398_v36 = vor.u32 %v397_v12, %v396_v13  ;;  %v399_v21 = vshll.u32 %v1189_v56, %v384_v42  ;;  %v400_v23 = vshrl.u32 %v1190_v63, %v385_v3 }
 0x15a   :  { %v559_v24 = vsel %vm476_vm2, %v558_v15, %v557_v11  ;;  %v561_v25 = vsel %vm476_vm2, %v560_v57, %v1628_v17  ;;  %v956_v26 = vsub.s32 0, %v954_v22  ;;  %v418_v10 = vshll.u32 %v378_v16, 8 }
 0x15b   :  { %v562_v28 = vsel %vm1688_vm4, %v1461_v27, %v559_v24  ;;  %v386_v35 = vshrl.u32 %v1185_v46, %v385_v3  ;;  %v401_v44 = vor.u32 %v400_v23, %v399_v21  ;;  %v790_v6 = vshrl.u32 %v789_v8, 23 }
 0x15c   :  { %1146 = vcosq.f32 %v562_v28  ;;  %v1056_v39 = vmin.u32 %v956_v26, %v954_v22  ;;  %vm402_vm5 = vcmp.lt.s32.totalorder %v383_v60, 1  ;;  %vm405_vm6 = vcmp.lt.s32.totalorder %v383_v60, 4 }
 0x15d   :  { %1148 = vsinq.f32 %v562_v28  ;;  %v407_v51 = vsel %vm405_vm6, %v395_v20, 2102212464  ;;  %v410_v18 = vsel %vm402_vm5, %v389_v43, %v392_v53  ;;  %v411_v14 = vsel %vm405_vm6, %v398_v36, 920167782 }
 0x15e   :  { %v958_v1 = vclz %v1056_v39  ;;  %vm403_vm7 = vcmp.lt.s32.totalorder %v383_v60, 2  ;;  %vm404_vm8 = vcmp.lt.s32.totalorder %v383_v60, 3  ;;  %v406_v17 = vsel %vm402_vm5, %v386_v35, %v389_v43 }
 0x15f   :  { %v408_v59 = vsel %vm404_vm8, %v392_v53, %v407_v51  ;;  %v412_v58 = vsel %vm404_vm8, %v395_v20, %v411_v14  ;;  %v414_v42 = vsel %vm402_vm5, %v392_v53, %v395_v20  ;;  %v415_v31 = vsel %vm405_vm6, %v401_v44, 1326507024 }
 0x160   :  { %v563_v62 = vsel %vm1688_vm4, 0, %v561_v25  ;;  %v1057_v0 = vadd.s32 4294967294, %v958_v1  ;;  %v413_v45 = vsel %vm403_vm7, %v410_v18, %v412_v58  ;;  %v416_v2 = vsel %vm404_vm8, %v398_v36, %v415_v31 }
 0x161   :  { %v409_v57 = vsel %vm403_vm7, %v406_v17, %v408_v59  ;;  %v417_v16 = vsel %vm403_vm7, %v414_v42, %v416_v2  ;;  %v1720_v3 = vmul.u32.u64.low %v418_v10, %v413_v45  ;;  %v1721_v38 = vmul.u32.u64.high %v418_v10, %v413_v45, %v1720_v3 }
 0x162   :  { %vm1058_vm9 = vcmp.lt.s32.totalorder %v1057_v0, 0  ;;  %v1724_v5 = vmul.u32.u64.low %v418_v10, %v417_v16  ;;  %v1725_v47 = vmul.u32.u64.high %v418_v10, %v417_v16, %v1724_v5  ;;  %v1051_v4 = vadd.s32 4294967169, %v790_v6 }
 0x163   :  { %v567_v29 = vadd.s32 3, %v563_v62  ;;  %v961_v33 = vsel %vm1058_vm9, 0, %v1057_v0  ;;  %v946_v48 = vadd.s32 %v1660_v61, %v1666_v30  ;;  %v425_v55 = vmul.u32 %v418_v10, %v409_v57 }
 0x164   :  { %v962_v8 = vsub.s32 32, %v961_v33  ;;  %v966_v11 = vsub.s32 4294967266, %v961_v33  ;;  %v796_v49 = vadd.s32 1, %v1051_v4  ;;  %v428_v40 = vadd.s32 1, %v1721_v38 }
 0x165   :  { %v786_v60 = vand.u32 2147483647, %v1684_v41  ;;  %v963_v32 = vshll.u32 %v954_v22, %v961_v33  ;;  %vm427_vm11 = vc.u32 %v1725_v47, %v1720_v3  ;;  %v568_v15 = vand.u32 3, %v567_v29 }
 0x166   :  { %v964_v13 = vshrl.u32 %v946_v48, %v962_v8  ;;  %v967_v12 = vadd.s32 127, %v966_v11  ;;  %v429_v43 = vsel %vm427_vm11, %v428_v40, %v1721_v38  ;;  %vm797_vm10 = vcmp.gt.s32.totalorder %v796_v49, 0 }
 0x167   :  { %v430_v30 = vadd.s32 %v429_v43, %v425_v55  ;;  %v798_v20 = vsel %vm797_vm10, %v796_v49, 0  ;;  %vm566_vm12 = vweird.f32 %v1461_v27  ;;  %vm892_vm13 = vcmp.lt.s32.totalorder %v1556_v9, 0 }
 0x168   :  { %v965_v53 = vor.u32 %v964_v13, %v963_v32  ;;  %v968_v61 = vshll.u32 %v967_v12, 23  ;;  %v976_v22 = vsub.s32 4, %v1695_v7  ;;  %v800_v21 = vand.u32 31, %v798_v20 }
 0x169   :  { %v1147_v36 = vpop.eup %1146  ;;  %vm1739_vm14 = vcmp.le.f32.partialorder %v890_v37, 0.7853982  ;;  %v431_v10 = vadd.s32 536870912, %v430_v30  ;;  %v793_v28 = vand.u32 8388607, %v786_v60  ;;  %vm570_vm15 = vcmp.eq.s32.totalorder %v568_v15, 0 }
 0x16a   :  { %v1149_v23 = vpop.eup %1148  ;;  %v574_v24 = vxor.u32 2147483648, %v1147_v36  ;;  %v969_v26 = vor.u32 4788187, %v968_v61  ;;  %vm573_vm0 = vcmp.eq.s32.totalorder %v568_v15, 2  ;;  %v801_v44 = vsub.s32 32, %v800_v21 }
 0x16b   :  { %v571_v35 = vxor.u32 2147483648, %v1149_v23  ;;  %v972_v51 = vcvt.s32.f32 %v965_v53  ;;  %v1745_v18 = vshrl.u32 %v431_v10, 30  ;;  %vm569_vm1 = vcmp.lt.s32.totalorder %v568_v15, 2 }
 0x16c   :  { %v575_v6 = vsel %vm573_vm0, %v574_v24, %v1149_v23  ;;  %v970_v39 = vand.u32 2147483647, %v969_v26  ;;  %v977_v37 = vsel %vm892_vm13, %v976_v22, %v1695_v7  ;;  %v804_v1 = vshrl.u32 %v1186_v50, %v801_v44 }
 0x16d   :  { %v572_v14 = vsel %vm570_vm15, %v1147_v36, %v571_v35  ;;  %v433_v58 = vshll.u32 %v1745_v18, 30  ;;  %v794_v42 = vor.u32 8388608, %v793_v28  ;;  %v803_v62 = vshll.u32 %v1185_v46, %v800_v21 }
 0x16e   :  { %v576_v17 = vsel %vm569_vm1, %v572_v14, %v575_v6  ;;  %v973_v59 = vmul.f32 %v972_v51, %v970_v39  ;;  %v807_v0 = vshrl.u32 %v1187_v52, %v801_v44  ;;  %v810_v45 = vshrl.u32 %v1188_v54, %v801_v44 }
 0x16f   :  { %v577_v31 = vsel %vm566_vm12, nan, %v576_v17  ;;  %v434_v57 = vsub.s32 %v430_v30, %v433_v58  ;;  %v799_v7 = vshrl.u32 %v798_v20, 5  ;;  %v806_v16 = vshll.u32 %v1186_v50, %v800_v21 }
 0x170   :  { %997 = vst [vmem:[#allocation2 + $0x18] sm:$0xff] %v577_v31  ;;  %v974_v2 = vxor.u32 2147483648, %v973_v59  ;;  %v805_v38 = vor.u32 %v804_v1, %v803_v62  ;;  %v809_v5 = vshll.u32 %v1187_v52, %v800_v21  ;;  %v812_v4 = vshll.u32 %v1188_v54, %v800_v21 }
 0x171   :  { %v813_v27 = vshrl.u32 %v1189_v56, %v801_v44  ;;  %v436_v33 = vsub.s32 0, %v434_v57  ;;  %v815_v48 = vshll.u32 %v1189_v56, %v800_v21  ;;  %v816_v8 = vshrl.u32 %v1190_v63, %v801_v44 }
 0x172   :  { %v975_v29 = vsel %vm892_vm13, %v974_v2, %v973_v59  ;;  %v808_v50 = vor.u32 %v807_v0, %v806_v16  ;;  %v811_v49 = vor.u32 %v810_v45, %v809_v5  ;;  %v979_v40 = vsel %vm1739_vm14, 0, %v977_v37 }
 0x173   :  { %v978_v11 = vsel %vm1739_vm14, %v1556_v9, %v975_v29  ;;  %v814_v55 = vor.u32 %v813_v27, %v812_v4  ;;  %v1036_v52 = vmin.u32 %v436_v33, %v434_v57  ;;  %v817_v54 = vor.u32 %v816_v8, %v815_v48 }
 0x174   :  { %1150 = vcosq.f32 %v978_v11  ;;  %v802_v32 = vshrl.u32 %v1185_v46, %v801_v44  ;;  %v834_v13 = vshll.u32 %v794_v42, 8  ;;  %vm818_vm2 = vcmp.lt.s32.totalorder %v799_v7, 1 }
 0x175   :  { %1152 = vsinq.f32 %v978_v11  ;;  %v438_v56 = vclz %v1036_v52  ;;  %vm820_vm3 = vcmp.lt.s32.totalorder %v799_v7, 3  ;;  %vm821_vm4 = vcmp.lt.s32.totalorder %v799_v7, 4 }
 0x176   :  { %v823_v63 = vsel %vm821_vm4, %v811_v49, 2102212464  ;;  %v826_v12 = vsel %vm818_vm2, %v805_v38, %v808_v50  ;;  %v827_v15 = vsel %vm821_vm4, %v814_v55, 920167782  ;;  %v830_v43 = vsel %vm818_vm2, %v808_v50, %v811_v49 }
 0x177   :  { %v1037_v53 = vadd.s32 4294967294, %v438_v56  ;;  %vm819_vm5 = vcmp.lt.s32.totalorder %v799_v7, 2  ;;  %v828_v61 = vsel %vm820_vm3, %v811_v49, %v827_v15  ;;  %v831_v30 = vsel %vm821_vm4, %v817_v54, 1326507024 }
 0x178   :  { %v822_v20 = vsel %vm818_vm2, %v802_v32, %v805_v38  ;;  %v824_v36 = vsel %vm820_vm3, %v808_v50, %v823_v63  ;;  %v829_v22 = vsel %vm819_vm5, %v826_v12, %v828_v61  ;;  %v832_v21 = vsel %vm820_vm3, %v814_v55, %v831_v30 }
 0x179   :  { %vm1038_vm6 = vcmp.lt.s32.totalorder %v1037_v53, 0  ;;  %v833_v46 = vsel %vm819_vm5, %v830_v43, %v832_v21  ;;  %v1773_v23 = vmul.u32.u64.low %v834_v13, %v829_v22  ;;  %v1774_v24 = vmul.u32.u64.high %v834_v13, %v829_v22, %v1773_v23 }
 0x17a   :  { %v983_v25 = vadd.s32 3, %v979_v40  ;;  %v441_v26 = vsel %vm1038_vm6, 0, %v1037_v53  ;;  %v1776_v10 = vmul.u32.u64.low %v834_v13, %v833_v46  ;;  %v1777_v28 = vmul.u32.u64.high %v834_v13, %v833_v46, %v1776_v10 }
 0x17b   :  { %v426_v35 = vadd.s32 %v1720_v3, %v1725_v47  ;;  %v442_v44 = vsub.s32 32, %v441_v26  ;;  %v446_v6 = vsub.s32 4294967266, %v441_v26  ;;  %v825_v39 = vsel %vm819_vm5, %v822_v20, %v824_v36 }
 0x17c   :  { %v443_v51 = vshll.u32 %v434_v57, %v441_v26  ;;  %v844_v1 = vadd.s32 1, %v1774_v24  ;;  %v984_v17 = vand.u32 3, %v983_v25  ;;  %v841_v59 = vmul.u32 %v834_v13, %v825_v39 }
 0x17d   :  { %v444_v14 = vshrl.u32 %v426_v35, %v442_v44  ;;  %v447_v37 = vadd.s32 127, %v446_v6  ;;  %vm843_vm7 = vc.u32 %v1777_v28, %v1773_v23  ;;  %vm982_vm10 = vweird.f32 %v1556_v9 }
 0x17e   :  { %v845_v31 = vsel %vm843_vm7, %v844_v1, %v1774_v24  ;;  %vm989_vm8 = vcmp.eq.s32.totalorder %v984_v17, 2  ;;  %vm986_vm9 = vcmp.eq.s32.totalorder %v984_v17, 0  ;;  %vm985_vm11 = vcmp.lt.s32.totalorder %v984_v17, 2 }
 0x17f   :  { %v445_v58 = vor.u32 %v444_v14, %v443_v51  ;;  %v448_v42 = vshll.u32 %v447_v37, 23  ;;  %v846_v0 = vadd.s32 %v845_v31, %v841_v59  ;;  %vm372_vm12 = vcmp.lt.s32.totalorder %v1632_v19, 0 }
 0x180   :  { %v456_v11 = vsub.s32 4, %v1745_v18  ;;  %vm371_vm13 = vcmp.le.f32.partialorder %v370_v34, 0.7853982  ;;  %v842_v12 = vadd.s32 %v1773_v23, %v1777_v28  ;;  %vm462_vm2 = vweird.f32 %v1632_v19 }
 0x181   :  { %v1151_v62 = vpop.eup %1150  ;;  %v449_v45 = vor.u32 4788187, %v448_v42  ;;  %v847_v57 = vadd.s32 536870912, %v846_v0  ;;  %v452_v38 = vcvt.s32.f32 %v445_v58  ;;  %vm788_vm3 = vcmp.lt.s32.totalorder %v1684_v41, 0 }
 0x182   :  { %v1153_v3 = vpop.eup %1152  ;;  %v990_v47 = vxor.u32 2147483648, %v1151_v62  ;;  %v457_v9 = vsel %vm372_vm12, %v456_v11, %v1745_v18  ;;  %vm787_vm4 = vcmp.le.f32.partialorder %v786_v60, 0.7853982 }
 0x183   :  { %v987_v2 = vxor.u32 2147483648, %v1153_v3  ;;  %v450_v16 = vand.u32 2147483647, %v449_v45  ;;  %v848_v4 = vshrl.u32 %v847_v57, 30  ;;  %v459_v32 = vsel %vm371_vm13, 0, %v457_v9 }
 0x184   :  { %v991_v7 = vsel %vm989_vm8, %v990_v47, %v1153_v3  ;;  %v463_v56 = vadd.s32 3, %v459_v32  ;;  %vm878_vm8 = vweird.f32 %v1684_v41 }
 0x185   :  { %v988_v5 = vsel %vm986_vm9, %v1151_v62, %v987_v2  ;;  %v453_v29 = vmul.f32 %v452_v38, %v450_v16  ;;  %v849_v48 = vshll.u32 %v848_v4, 30  ;;  %v872_v39 = vsub.s32 4, %v848_v4 }
 0x186   :  { %v992_v27 = vsel %vm985_vm11, %v988_v5, %v991_v7  ;;  %v464_v34 = vand.u32 3, %v463_v56 }
 0x187   :  { %v993_v33 = vsel %vm982_vm10, nan, %v992_v27  ;;  %v454_v8 = vxor.u32 2147483648, %v453_v29  ;;  %v850_v50 = vsub.s32 %v846_v0, %v849_v48  ;;  %v873_v37 = vsel %vm788_vm3, %v872_v39, %v848_v4 }
 0x188   :  { %1001 = vst [vmem:[#allocation2 + $0x38] sm:$0xff] %v993_v33  ;;  %vm469_vm15 = vcmp.eq.s32.totalorder %v464_v34, 2  ;;  %vm466_vm0 = vcmp.eq.s32.totalorder %v464_v34, 0  ;;  %vm465_vm1 = vcmp.lt.s32.totalorder %v464_v34, 2  ;;  %v875_v1 = vsel %vm787_vm4, 0, %v873_v37 }
 0x189   :  { %v455_v49 = vsel %vm372_vm12, %v454_v8, %v453_v29  ;;  %v852_v52 = vsub.s32 0, %v850_v50  ;;  %v879_v17 = vadd.s32 3, %v875_v1 }
 0x18a   :  { %v458_v55 = vsel %vm371_vm13, %v1632_v19, %v455_v49 }
 0x18b   :  { %1154 = vcosq.f32 %v458_v55  ;;  %v1052_v54 = vmin.u32 %v852_v52, %v850_v50  ;;  %v880_v19 = vand.u32 3, %v879_v17 }
 0x18c   :  { %1156 = vsinq.f32 %v458_v55 }
 0x18d   :  { %v854_v40 = vclz %v1052_v54  ;;  %vm885_vm5 = vcmp.eq.s32.totalorder %v880_v19, 2  ;;  %vm882_vm6 = vcmp.eq.s32.totalorder %v880_v19, 0  ;;  %vm881_vm7 = vcmp.lt.s32.totalorder %v880_v19, 2 }
 0x18f   :  { %v1053_v13 = vadd.s32 4294967294, %v854_v40 }
 0x191   :  { %vm1054_vm14 = vcmp.lt.s32.totalorder %v1053_v13, 0 }
 0x192   :  { %v857_v63 = vsel %vm1054_vm14, 0, %v1053_v13 }
 0x193   :  { %v858_v15 = vsub.s32 32, %v857_v63  ;;  %v862_v43 = vsub.s32 4294967266, %v857_v63  ;;  %v859_v53 = vshll.u32 %v850_v50, %v857_v63 }
 0x195   :  { %v860_v61 = vshrl.u32 %v842_v12, %v858_v15  ;;  %v863_v30 = vadd.s32 127, %v862_v43 }
 0x197   :  { %v861_v36 = vor.u32 %v860_v61, %v859_v53  ;;  %v864_v22 = vshll.u32 %v863_v30, 23 }
 0x198   :  { %v1155_v20 = vpop.eup %1154 }
 0x199   :  { %v1157_v18 = vpop.eup %1156  ;;  %v470_v21 = vxor.u32 2147483648, %v1155_v20  ;;  %v865_v24 = vor.u32 4788187, %v864_v22  ;;  %v868_v23 = vcvt.s32.f32 %v861_v36 }
 0x19a   :  { %v467_v46 = vxor.u32 2147483648, %v1157_v18 }
 0x19b   :  { %v471_v25 = vsel %vm469_vm15, %v470_v21, %v1157_v18  ;;  %v866_v10 = vand.u32 2147483647, %v865_v24 }
 0x19c   :  { %v468_v26 = vsel %vm466_vm0, %v1155_v20, %v467_v46 }
 0x19d   :  { %v472_v28 = vsel %vm465_vm1, %v468_v26, %v471_v25  ;;  %v869_v44 = vmul.f32 %v868_v23, %v866_v10 }
 0x19e   :  { %v473_v35 = vsel %vm462_vm2, nan, %v472_v28 }
 0x19f   :  { %996 = vst [vmem:[#allocation2 + $0x10] sm:$0xff] %v473_v35  ;;  %v870_v6 = vxor.u32 2147483648, %v869_v44 }
 0x1a1   :  { %v871_v51 = vsel %vm788_vm3, %v870_v6, %v869_v44 }
 0x1a2   :  { %v874_v14 = vsel %vm787_vm4, %v1684_v41, %v871_v51 }
 0x1a3   :  { %1158 = vcosq.f32 %v874_v14 }
 0x1a4   :  { %1160 = vsinq.f32 %v874_v14 }
 0x1b0   :  { %v1159_v59 = vpop.eup %1158 }
 0x1b1   :  { %v1161_v58 = vpop.eup %1160  ;;  %v886_v42 = vxor.u32 2147483648, %v1159_v59 }
 0x1b2   :  { %v883_v31 = vxor.u32 2147483648, %v1161_v58 }
 0x1b3   :  { %v887_v62 = vsel %vm885_vm5, %v886_v42, %v1161_v58 }
 0x1b4   :  { %v884_v60 = vsel %vm882_vm6, %v1159_v59, %v883_v31 }
 0x1b5   :  { %v888_v0 = vsel %vm881_vm7, %v884_v60, %v887_v62 }
 0x1b6   :  { %v889_v3 = vsel %vm878_vm8, nan, %v888_v0 }
 0x1b7   :  { %1000 = vst [vmem:[#allocation2 + $0x30] sm:$0xff] %v889_v3 }
 0x1b8   :  { %1174 = shalt.err (!%p1171_p4)
}
 0x1b9   :  { %s1192_s9 = smov 128   ;;  %s1193_s10 = smov 8  }
 0x1ba   :  { %1013 = dma.vmem_to_hbm [thread:$0]  %s1008_s7, 1024, %s1805_s3, [#allocation3], %s1192_s9, %s1192_s9, %s1193_s10  }
 0x1bb   :  { %1183 = dma.done.wait [#allocation3], 1024  }
 0x1bc   :  { %1184 = vsyncadd [#allocation3], 4294966272 }
 0x1bd   :  { %1017 = vsyncpa [#allocation3], 1 }

</bundles_post_ra>
